<compile_context>
chip_gen: v5e
topology: v5e:2x2
jax: 0.10.0
libtpu: 0.0.40
codegen_flags: <defaults>
</compile_context>

<pallas_src>
import jax
import jax.numpy as jnp
from jax import lax
from jax.experimental import pallas as pl
from jax.experimental.pallas import tpu as pltpu

EMBEDDING_SIZE = 2


def _round_up(x: int, m: int) -> int:
    return ((x + m - 1) // m) * m


def _word2vec_kernel(ids_ref, w_in_ref, w_out_ref, out_ref, hidden_ref):
    """One (TB, TN) output tile of  one_hot(ids) @ w_in @ w_out.

    ids_ref    : SMEM (Bp,) int32   -- scalar-prefetched token ids
    w_in_ref   : VMEM (voc, 2) f32  -- full embedding table (resident)
    w_out_ref  : VMEM (2, TN) f32   -- vocab tile of the output projection
    out_ref    : VMEM (TB, TN)      -- lane-dense output tile
    hidden_ref : VMEM (TB, 2) f32   -- gathered embeddings; persists across the
                                       (sequential) vocab-tile grid axis
    """
    i = pl.program_id(0)
    tb = out_ref.shape[0]
    voc = w_in_ref.shape[0]

    # Gather the TB embedding rows for this batch tile once (at vocab tile 0)
    # and reuse them for every vocab tile of the same batch tile.
    @pl.when(pl.program_id(1) == 0)
    def _gather():
        def body(b, carry):
            idx = ids_ref[i * tb + b]
            idx = jnp.clip(idx, 0, voc - 1)  # OOB VMEM reads are unchecked on TPU
            hidden_ref[pl.ds(b, 1), :] = w_in_ref[pl.ds(idx, 1), :]
            return carry

        lax.fori_loop(0, tb, body, 0)

    # hidden @ w_out with K = 2: two rank-1 FMAs on the VPU over a lane-dense
    # (TB, TN) slab.
    h = hidden_ref[...]                                    # (TB, 2) f32
    acc = (h[:, 0:1] * w_out_ref[0:1, :] +
           h[:, 1:2] * w_out_ref[1:2, :])                  # (TB, TN) f32
    out_ref[...] = acc.astype(out_ref.dtype)


def word2vec_forward(ids, w_in, w_out, *, out_dtype=jnp.float32,
                     tb=None, tn=None):
    """Forward pass of the word2vec module for one-hot inputs.

    Equivalent to (one_hot(ids, voc) @ w_in) @ w_out of the PyTorch module,
    but takes the token ids directly instead of the dense one-hot matrix.

    out_dtype: keep f32 to match the PyTorch module; bf16 halves the dominant
               HBM writeback on v6e/v7x if the consumer tolerates it.
    """
    voc_size, emb = w_in.shape
    assert emb == EMBEDDING_SIZE and w_out.shape == (emb, voc_size)
    (batch,) = ids.shape

    # Tile geometry: lane-dense output tiles, capped at 256 x 2048 f32 so the
    # double-buffered out tile (~4 MiB) also fits v7x's 64 MiB VMEM.
    if tn is None:
        tn = 2048 if voc_size >= 2048 else _round_up(voc_size, 128)
    if tb is None:
        tb = 256 if batch >= 256 else _round_up(batch, 8)
    vp = _round_up(voc_size, tn)
    bp = _round_up(batch, tb)

    ids_p = jnp.pad(ids.astype(jnp.int32), (0, bp - batch))
    w_out_p = jnp.pad(w_out, ((0, 0), (0, vp - voc_size)))

    grid = (bp // tb, vp // tn)

    out_bytes = bp * vp * jnp.dtype(out_dtype).itemsize
    cost = pl.CostEstimate(
        flops=2 * bp * vp * emb,
        transcendentals=0,
        bytes_accessed=out_bytes + voc_size * emb * 4 + emb * vp * 4 + bp * 4,
    )

    grid_spec = pltpu.PrefetchScalarGridSpec(
        num_scalar_prefetch=1,             # ids -> SMEM
        grid=grid,
        in_specs=[
            # Full embedding table resident in VMEM (voc * 2 * 4 B is tiny).
            pl.BlockSpec((voc_size, emb), lambda i, j, ids_sref: (0, 0)),
            # Vocab tile of the output projection.
            pl.BlockSpec((emb, tn), lambda i, j, ids_sref: (0, j)),
        ],
        out_specs=pl.BlockSpec((tb, tn), lambda i, j, ids_sref: (i, j)),
        scratch_shapes=[pltpu.VMEM((tb, emb), jnp.float32)],
    )

    out_p = pl.pallas_call(
        _word2vec_kernel,
        out_shape=jax.ShapeDtypeStruct((bp, vp), out_dtype),
        grid_spec=grid_spec,
        compiler_params=pltpu.CompilerParams(
            dimension_semantics=("parallel", "arbitrary"),
        ),
        cost_estimate=cost,
    )(ids_p, w_in, w_out_p)

    return out_p[:batch, :voc_size]


if __name__ == "__main__":
    key = jax.random.PRNGKey(0)
    k_ids, k_in, k_out = jax.random.split(key, 3)

    # --- small case (toy vocabulary, single-tile grid) ----------------------
    batch, voc_size = 8, 16
    w_in = jax.random.normal(k_in, (voc_size, EMBEDDING_SIZE), jnp.float32)
    w_out = jax.random.normal(k_out, (EMBEDDING_SIZE, voc_size), jnp.float32)
    ids = jax.random.randint(k_ids, (batch,), 0, voc_size, dtype=jnp.int32)

    out = jax.block_until_ready(word2vec_forward(ids, w_in, w_out))

    x = jax.nn.one_hot(ids, voc_size, dtype=jnp.float32)
    ref = (x @ w_in) @ w_out
    assert out.shape == (batch, voc_size)
    assert jnp.allclose(out, ref, atol=1e-5, rtol=1e-5)

    # --- multi-tile case (exercises grid, padding, scratch reuse across j) --
    batch2, voc_size2 = 20, 300
    k_ids2, k_in2, k_out2 = jax.random.split(jax.random.PRNGKey(1), 3)
    w_in2 = jax.random.normal(k_in2, (voc_size2, EMBEDDING_SIZE), jnp.float32)
    w_out2 = jax.random.normal(k_out2, (EMBEDDING_SIZE, voc_size2), jnp.float32)
    ids2 = jax.random.randint(k_ids2, (batch2,), 0, voc_size2, dtype=jnp.int32)

    out2 = jax.block_until_ready(
        word2vec_forward(ids2, w_in2, w_out2, tb=8, tn=128))  # grid = (3, 3)

    x2 = jax.nn.one_hot(ids2, voc_size2, dtype=jnp.float32)
    ref2 = (x2 @ w_in2) @ w_out2
    assert out2.shape == (batch2, voc_size2)
    assert jnp.allclose(out2, ref2, atol=1e-5, rtol=1e-5)

    print("KERNEL_OK")
</pallas_src>

<mosaic_0001>
module attributes {stable_mosaic.version = 11 : i64} {
  func.func @_word2vec_kernel(%arg0: i32, %arg1: i32, %arg2: memref<8xi32, #tpu.memory_space<smem>>, %arg3: memref<16x2xf32, #tpu.memory_space<vmem>>, %arg4: memref<2x128xf32, #tpu.memory_space<vmem>>, %arg5: memref<8x128xf32, #tpu.memory_space<vmem>>, %arg6: memref<8x2xf32, #tpu.memory_space<vmem>>) attributes {dimension_semantics = [#tpu.dimension_semantics<parallel>, #tpu.dimension_semantics<arbitrary>], iteration_bounds = array<i64: 1, 1>, scalar_prefetch = 1 : i64, scratch_operands = 1 : i64, tpu.core_type = #tpu.core_type<tc>, window_params = [{pipeline_mode = #tpu.pipeline_mode<synchronous>, transform_indices = @transform_0, window_bounds = array<i64: 16, 2>}, {transform_indices = @transform_1, window_bounds = array<i64: 2, 128>}, {transform_indices = @transform_2, window_bounds = array<i64: 8, 128>}]} {
    %c0_i32 = arith.constant 0 : i32
    %0 = arith.cmpi eq, %arg1, %c0_i32 : i32
    %1 = arith.extui %0 : i1 to i32
    %c0_i32_0 = arith.constant 0 : i32
    %2 = arith.cmpi ne, %1, %c0_i32_0 : i32
    scf.if %2 {
      %c0_i32_7 = arith.constant 0 : i32
      %c8_i32 = arith.constant 8 : i32
      %16 = arith.addi %c0_i32_7, %c8_i32 : i32
      %c1_i32 = arith.constant 1 : i32
      scf.for %arg7 = %c0_i32_7 to %16 step %c1_i32  : i32 {
        %c8_i32_9 = arith.constant 8 : i32
        %17 = arith.muli %arg0, %c8_i32_9 : i32
        %18 = arith.addi %17, %arg7 : i32
        %19 = arith.index_cast %18 : i32 to index
        %20 = memref.load %arg2[%19] : memref<8xi32, #tpu.memory_space<smem>>
        %c0_i32_10 = arith.constant 0 : i32
        %c15_i32 = arith.constant 15 : i32
        %21 = arith.maxsi %c0_i32_10, %20 : i32
        %22 = arith.minsi %c15_i32, %21 : i32
        %23 = arith.index_cast %22 : i32 to index
        %c0_11 = arith.constant 0 : index
        %24 = vector.load %arg3[%23, %c0_11] : memref<16x2xf32, #tpu.memory_space<vmem>>, vector<1x2xf32>
        %25 = arith.index_cast %arg7 : i32 to index
        %c0_12 = arith.constant 0 : index
        %26 = vector.load %arg6[%25, %c0_12] : memref<8x2xf32, #tpu.memory_space<vmem>>, vector<1x2xf32>
        tpu.vector_store %arg6[%25, %c0_12], %24 {strides = array<i32>} : memref<8x2xf32, #tpu.memory_space<vmem>>, vector<1x2xf32>,
      }
      %c8_i32_8 = arith.constant 8 : i32
    } else {
    }
    %c0 = arith.constant 0 : index
    %c0_1 = arith.constant 0 : index
    %3 = vector.load %arg6[%c0, %c0_1] : memref<8x2xf32, #tpu.memory_space<vmem>>, vector<8x2xf32>
    %4 = vector.extract_strided_slice %3 {offsets = [0, 0], sizes = [8, 1], strides = [1, 1]} : vector<8x2xf32> to vector<8x1xf32>
    %c0_2 = arith.constant 0 : index
    %c0_3 = arith.constant 0 : index
    %5 = vector.load %arg4[%c0_2, %c0_3] : memref<2x128xf32, #tpu.memory_space<vmem>>, vector<1x128xf32>
    %6 = vector.broadcast %4 : vector<8x1xf32> to vector<8x128xf32>
    %7 = vector.broadcast %5 : vector<1x128xf32> to vector<8x128xf32>
    %8 = arith.mulf %6, %7 : vector<8x128xf32>
    %9 = vector.extract_strided_slice %3 {offsets = [0, 1], sizes = [8, 1], strides = [1, 1]} : vector<8x2xf32> to vector<8x1xf32>
    %c1 = arith.constant 1 : index
    %c0_4 = arith.constant 0 : index
    %10 = vector.load %arg4[%c1, %c0_4] : memref<2x128xf32, #tpu.memory_space<vmem>>, vector<1x128xf32>
    %11 = vector.broadcast %9 : vector<8x1xf32> to vector<8x128xf32>
    %12 = vector.broadcast %10 : vector<1x128xf32> to vector<8x128xf32>
    %13 = arith.mulf %11, %12 : vector<8x128xf32>
    %14 = arith.addf %8, %13 : vector<8x128xf32>
    %c0_5 = arith.constant 0 : index
    %c0_6 = arith.constant 0 : index
    %15 = vector.load %arg5[%c0_5, %c0_6] : memref<8x128xf32, #tpu.memory_space<vmem>>, vector<8x128xf32>
    tpu.vector_store %arg5[%c0_5, %c0_6], %14 {strides = array<i32>} : memref<8x128xf32, #tpu.memory_space<vmem>>, vector<8x128xf32>,
    return
  }
  func.func @transform_0(%arg0: i32, %arg1: i32, %arg2: memref<8xi32, #tpu.memory_space<smem>>) -> (i32, i32) {
    %c0_i32 = arith.constant 0 : i32
    %c0_i32_0 = arith.constant 0 : i32
    %c0_i32_1 = arith.constant 0 : i32
    return %c0_i32, %c0_i32_0 : i32, i32
  }
  func.func @transform_1(%arg0: i32, %arg1: i32, %arg2: memref<8xi32, #tpu.memory_space<smem>>) -> (i32, i32) {
    %c0_i32 = arith.constant 0 : i32
    %c0_i32_0 = arith.constant 0 : i32
    return %c0_i32, %arg1 : i32, i32
  }
  func.func @transform_2(%arg0: i32, %arg1: i32, %arg2: memref<8xi32, #tpu.memory_space<smem>>) -> (i32, i32) {
    %c0_i32 = arith.constant 0 : i32
    return %arg0, %arg1 : i32, i32
  }
}

</mosaic_0001>

<bundles_post_ra>
// kernel: tpu_custom_call.1
= control target key start
LH: loop header
LB: loop body
LE: loop exit
PB: predicated region body
PF: predicated region fallthrough
CT: control target
= control target key end

     0   :  { %s155_s15 = smov [#allocation4]   ;;  %s194_s0 = inlined_call_operand.vmem [shape: s32[8], index: 0, kind: input, shape index: {}]   ;;  %s195_s1 = inlined_call_operand.vmem [shape: f32[16,2], index: 1, kind: input, shape index: {}]   ;;  %s196_s2 = inlined_call_operand.vmem [shape: f32[2,128], index: 2, kind: input, shape index: {}]   ;;  %s197_s3 = inlined_call_operand.hbm [shape: f32[8,128], index: 3, kind: output, shape index: {}]  }
   0x1   :  { %s9_s14 = sshll.u32 %s194_s0, 4  ;;  %s10_s14 = int_to_ptr.vmem [resolvable:$true] %s9_s14 }
   0x2   :  { %12 = dma.vmem_to_smem %s10_s14, 16, %s155_s15, [#allocation3] }
   0x3   :  { %147 = dma.done.wait [#allocation3], 16 }
   0x4   :  { %148 = vsyncadd [#allocation3], 4294967280 }
   0x5   :  { %15 = sfence }
   0x6   :  { %16 = vsyncpa [#allocation6], 0  ;;  %s151_s16 = smov 0  }
   0x7 LB: > { %s33_s17 = sld [smem:[#allocation4 + %s153_s16]]  ;;  %vm41_vm0 = vcmask 8192   ;;  %s40_s20 = scalar_lea.vmem [#allocation2], %s153_s16  ;;  %s153_s16 = sphi %s151_s16, %s30_s16  }
   0x8   : > { %s30_s16 = sadd.s32 1, %s153_s16  }
   0x9   : > { %p27_p2 = scmp.ge.s32.totalorder %s30_s16, 8  }
   0xa   :  { %v156_v2 = vmov (%p27_p2), 0   ;;  %v157_v3 = vmov (%p27_p2), 1   ;;  %v105_v5 = vld [vmem:[%s196_s2] ss:$0 sm:$0xff] (%p27_p2)  ;;  %v106_v6 = vld [vmem:[%s196_s2 + $0x1] ss:$0 sm:$0xff] (%p27_p2) }
   0xb   :  { %103 = vset.pattern.permute.xlu0 (%p27_p2), %v156_v2  ;;  %s158_s25 = smov (%p27_p2), [#allocation5]   ;;  %s68_s28 = sshll.u32 (%p27_p2), %s197_s3, 4  ;;  %s69_s28 = int_to_ptr.hbm [resolvable:$true] %s68_s28 }
   0xc   :  { %s66_s26 = sshll.u32 (%p27_p2), %s158_s25, 4  ;;  %s67_s26 = int_to_ptr.vmem [resolvable:$true] %s66_s26 }
   0xd   : > { %p34_p0 = scmp.gt.s32.totalorder %s33_s17, 0  ;;  %p84_p1 = scmp.lt.s32.totalorder %s33_s17, 15 }
   0xf   : > { %s199_s17 = smov (!%p34_p0, %s33_s17), 0  ;;  %29 = sbr.rel (!%p27_p2) target bundleno = 7 (0x7), region = 41 }
  0x10   : > { %s201_s17 = smov (!%p84_p1, %s199_s17), 15 }
  0x11   : > { %s38_s0 = scalar_lea.vmem %s195_s1, %s201_s17 }
  0x12   : > { %v39_v0 = vld [vmem:[%s38_s0] sm:$0x1] }
  0x13   : > { %42 = vst.msk [vmem:[%s40_s20] sm:$0x1] %vm41_vm0, %v39_v0 }
  0x1a   :  { %v43_v1 = vld [vmem:[#allocation2] sm:$0xff] }
  0x1b   :  { %47 = vperm.xlu0 %103, %v43_v1  }
  0x23   :  { %104 = vset.pattern.permute.xlu0 %v157_v3 }
  0x24   :  { %54 = vperm.xlu0 %104, %v43_v1  }
  0x8d   :  { %v48_v4 = vpop.permute.xlu0 %47 }
  0x8e   :  { %v51_v8 = vmul.f32 %v105_v5, %v48_v4 }
  0x96   :  { %v55_v7 = vpop.permute.xlu0 %54 }
  0x97   :  { %v58_v9 = vmul.f32 %v106_v6, %v55_v7 }
  0x99   :  { %v59_v10 = vadd.f32 %v58_v9, %v51_v8 }
  0x9b   :  { %60 = vst [vmem:[#allocation5] sm:$0xff] %v59_v10 }
  0x9c   :  { %71 = dma.vmem_to_hbm [thread:$0]  %s67_s26, 128, %s69_s28, [#allocation6]  }
  0x9d   :  { %149 = dma.done.wait [#allocation6], 128  }
  0x9e   :  { %150 = vsyncadd [#allocation6], 4294967168 }
  0x9f   :  { %76 = vsyncpa [#allocation6], 1 }

</bundles_post_ra>
